<compile_context>
chip_gen: v7x
topology: tpu7x:2x2x1
jax: 0.10.0
libtpu: 0.0.40
codegen_flags: <defaults>
</compile_context>

<pallas_src>
import numpy as np
import jax
import jax.numpy as jnp
from jax import lax
from jax.experimental import pallas as pl
from jax.experimental.pallas import tpu as pltpu

N = 128      # number of nodes
F = 128      # number of features (lin1 is F -> F)
K = 4        # propagation steps
ALPHA = 0.5  # RWR init coefficient


def hlgnn_kernel(temp_ref, x_ref, wt_ref, b_ref, adj_ref, ew_ref, out_ref):
    """Fused GCN normalization + lin1 + K-step polynomial propagation.

    temp_ref : SMEM (K+1,) f32  -- polynomial coefficients (scalar prefetch)
    x_ref    : VMEM (N, F) f32  -- input node features
    wt_ref   : VMEM (F, F) bf16 -- lin1 weight, pre-transposed (in, out)
    b_ref    : VMEM (1, F) f32  -- lin1 bias
    adj_ref  : VMEM (N, N) i8   -- adjacency 0/1 mask
    ew_ref   : VMEM (N, N) bf16 -- edge weights
    out_ref  : VMEM (N, F) f32  -- hidden (output)
    """
    # ---- fused symmetric GCN normalization.  Done first so the two f32
    # [N,N] temporaries (ew, w_adj) are dead before the lin1 result goes
    # live -> peak live set stays well under the 64-vreg file. ----
    ew = ew_ref[...].astype(jnp.float32)                    # [N,N] f32
    w_adj = adj_ref[...].astype(jnp.float32) * ew           # A * w (0/1 mask, exact)

    # Row-sum degree in BOTH layouts, no transpose:
    #   column layout via an XLU lane reduce,
    #   row layout via a ones-vector NT dot_general on the idle MXU
    #   (result row j = sum_k w_adj[j, k]).
    deg_col = jnp.sum(w_adj, axis=1, keepdims=True)         # [N,1]
    ones8 = jnp.ones((8, N), dtype=jnp.float32)             # 8 sublanes (MXU-friendly)
    deg_row8 = lax.dot_general(ones8, w_adj, (((1,), (1,)), ((), ())),
                               preferred_element_type=jnp.float32)   # [8,N], rows identical
    deg_row = deg_row8[0:1, :]                              # [1,N]

    d_col = jnp.where(deg_col > 0.0, lax.rsqrt(deg_col), 0.0)   # [N,1] EUP rsqrt
    d_row = jnp.where(deg_row > 0.0, lax.rsqrt(deg_row), 0.0)   # [1,N]

    # Full normalized operator (edge_weight applied twice, matching the
    # reference propagate(norm_func(adj, w), x, w)):
    #   ml[i,j] = d[i] * (adj*w)[i,j] * w[i,j] * d[j]
    ml = (d_col * (w_adj * ew) * d_row).astype(jnp.bfloat16)    # [N,N] bf16

    # ---- lin1: x @ W^T + b  (bf16 MXU operands, f32 accumulation) ----
    x = jnp.dot(x_ref[...].astype(jnp.bfloat16), wt_ref[...],
                preferred_element_type=jnp.float32) + b_ref[...]

    # ---- K-step propagation: statically unrolled, vreg-resident carry.
    # Per-step serial chain is pop(f32) -> pack(bf16) -> push; the hidden
    # accumulation hangs off the f32 result in otherwise-idle VALU slots. ----
    hidden = temp_ref[0] * x
    xb = x.astype(jnp.bfloat16)
    for k in range(K):                                      # K = 4: static unroll
        xf = jnp.dot(ml, xb, preferred_element_type=jnp.float32)
        xb = xf.astype(jnp.bfloat16)                        # feeds next matmul (on-chain)
        hidden = hidden + temp_ref[k + 1] * xf              # off-chain VPU filler
    out_ref[...] = hidden                                   # single full-tile store


def hlgnn_forward(x, w, b, adj_i8, edge_weight_bf16, temp):
    """Wrapper: parameter layout prep only; all math runs in the kernel."""
    # TODO(synk): F.dropout with training=True (random mask) not modeled; eval
    # mode dropout is the identity.
    wt = w.T.astype(jnp.bfloat16)   # PyTorch Linear stores (out, in); kernel wants (in, out)
    b2 = b.reshape(1, F)

    cost = pl.CostEstimate(
        flops=2 * N * F * F * (K + 1)        # lin1 + K propagation matmuls
              + 2 * 8 * N * N                # deg_row ones-vector matmul
              + 8 * N * N,                   # normalization elementwise
        transcendentals=2 * N,               # rsqrt in both layouts
        bytes_accessed=(x.size + b2.size + temp.size + N * F) * 4
                       + (wt.size + edge_weight_bf16.size) * 2
                       + adj_i8.size,
    )

    # TODO(synk): for Planetoid-scale N, tile the [N,N] operands with the
    # reduction (column) axis last, a resident f32 accumulator and bf16
    # adjacency tiles; budget tiles against v7x VMEM (64 MiB physical /
    # 32 MiB scoped, with BlockSpec double-buffering every input), not the
    # 128 MiB of v5e/v6e, and set vmem_limit_bytes explicitly.  At N=128
    # every operand is a single block and grid=(1,) is optimal.
    # TODO(synk): if this forward is called for many graphs, batch them on a
    # leading "parallel" grid axis so the ~0.35 us per-step overhead and the
    # per-graph DMA pipeline across iterations and the v7x second TensorCore
    # is used.
    grid_spec = pltpu.PrefetchScalarGridSpec(
        num_scalar_prefetch=1,       # temp -> SMEM scalars
        grid=(1,),
        in_specs=[
            pl.BlockSpec((N, F), lambda i, t: (0, 0)),   # x   (f32)
            pl.BlockSpec((F, F), lambda i, t: (0, 0)),   # W^T (bf16)
            pl.BlockSpec((1, F), lambda i, t: (0, 0)),   # bias (f32)
            pl.BlockSpec((N, N), lambda i, t: (0, 0)),   # adj mask (int8)
            pl.BlockSpec((N, N), lambda i, t: (0, 0)),   # edge weights (bf16)
        ],
        out_specs=pl.BlockSpec((N, F), lambda i, t: (0, 0)),
    )
    return pl.pallas_call(
        hlgnn_kernel,
        out_shape=jax.ShapeDtypeStruct((N, F), jnp.float32),
        grid_spec=grid_spec,
        compiler_params=pltpu.CompilerParams(
            dimension_semantics=("parallel",)),
        cost_estimate=cost,
    )(temp, x, wt, b2, adj_i8, edge_weight_bf16)


def reference_forward(x, w, b, adj, edge_weight, temp):
    """Pure-JAX f32 reference of the original module math (HIGHEST precision)."""
    w_adj = adj * edge_weight
    deg = jnp.sum(w_adj, axis=1)
    d = jnp.where(deg > 0, lax.rsqrt(deg), 0.0)
    p = d[:, None] * w_adj * d[None, :] * edge_weight
    h = jnp.dot(x, w.T, precision=lax.Precision.HIGHEST) + b
    hidden = temp[0] * h
    for k in range(K):
        h = jnp.dot(p, h, precision=lax.Precision.HIGHEST)
        hidden = hidden + temp[k + 1] * h
    return hidden


if __name__ == "__main__":
    key = jax.random.PRNGKey(0)
    k_x, k_w, k_b, k_a, k_e = jax.random.split(key, 5)

    # Inputs / parameters (deterministic, synthetic).
    x = jax.random.normal(k_x, (N, F), dtype=jnp.float32)
    w = jax.random.uniform(k_w, (F, F), minval=-0.1, maxval=0.1,
                           dtype=jnp.float32)                   # lin1.weight (out, in)
    b = jax.random.uniform(k_b, (F,), minval=-0.1, maxval=0.1,
                           dtype=jnp.float32)                   # lin1.bias
    # Random sparse-ish adjacency (~10% density): producer emits a compact
    # int8 0/1 mask and bf16 edge weights (the kernel's DMA-optimal dtypes).
    adj_i8 = (jax.random.uniform(k_a, (N, N)) < 0.1).astype(jnp.int8)
    edge_weight_bf16 = jax.random.uniform(
        k_e, (N, N), minval=0.5, maxval=1.5, dtype=jnp.float32).astype(jnp.bfloat16)

    # temp parameter: 'RWR' init with alpha=0.5.
    temp_np = (1.0 - ALPHA) * ALPHA ** np.arange(K + 1)
    temp_np = temp_np / np.sum(np.abs(temp_np))
    temp = jnp.asarray(temp_np, dtype=jnp.float32)

    out = hlgnn_forward(x, w, b, adj_i8, edge_weight_bf16, temp)
    jax.block_until_ready(out)

    # Reference runs the same (exactly-representable) input values in full f32.
    ref = reference_forward(x, w, b,
                            adj_i8.astype(jnp.float32),
                            edge_weight_bf16.astype(jnp.float32),
                            temp)
    # Kernel deliberately uses bf16 MXU operands (f32 accumulation), so compare
    # against the full-f32 reference with bf16-level tolerance.
    np.testing.assert_allclose(np.asarray(out), np.asarray(ref),
                               rtol=2e-2, atol=2e-2)

    print("KERNEL_OK")
</pallas_src>

<mosaic_0001>
module attributes {stable_mosaic.version = 11 : i64} {
  func.func @hlgnn_kernel(%arg0: i32, %arg1: memref<5xf32, #tpu.memory_space<smem>>, %arg2: memref<128x128xf32, #tpu.memory_space<vmem>>, %arg3: memref<128x128xbf16, #tpu.memory_space<vmem>>, %arg4: memref<1x128xf32, #tpu.memory_space<vmem>>, %arg5: memref<128x128xi8, #tpu.memory_space<vmem>>, %arg6: memref<128x128xbf16, #tpu.memory_space<vmem>>, %arg7: memref<128x128xf32, #tpu.memory_space<vmem>>) attributes {dimension_semantics = [#tpu.dimension_semantics<parallel>], iteration_bounds = array<i64: 1>, scalar_prefetch = 1 : i64, scratch_operands = 0 : i64, tpu.core_type = #tpu.core_type<tc>, window_params = [{pipeline_mode = #tpu.pipeline_mode<synchronous>, transform_indices = @transform_0, window_bounds = array<i64: 128, 128>}, {pipeline_mode = #tpu.pipeline_mode<synchronous>, transform_indices = @transform_1, window_bounds = array<i64: 128, 128>}, {pipeline_mode = #tpu.pipeline_mode<synchronous>, transform_indices = @transform_2, window_bounds = array<i64: 1, 128>}, {pipeline_mode = #tpu.pipeline_mode<synchronous>, transform_indices = @transform_3, window_bounds = array<i64: 128, 128>}, {pipeline_mode = #tpu.pipeline_mode<synchronous>, transform_indices = @transform_4, window_bounds = array<i64: 128, 128>}, {pipeline_mode = #tpu.pipeline_mode<synchronous>, transform_indices = @transform_5, window_bounds = array<i64: 128, 128>}]} {
    %c0 = arith.constant 0 : index
    %c0_0 = arith.constant 0 : index
    %0 = vector.load %arg6[%c0, %c0_0] : memref<128x128xbf16, #tpu.memory_space<vmem>>, vector<128x128xbf16>
    %1 = arith.extf %0 : vector<128x128xbf16> to vector<128x128xf32>
    %c0_1 = arith.constant 0 : index
    %c0_2 = arith.constant 0 : index
    %2 = vector.load %arg5[%c0_1, %c0_2] : memref<128x128xi8, #tpu.memory_space<vmem>>, vector<128x128xi8>
    %3 = arith.sitofp %2 : vector<128x128xi8> to vector<128x128xf32>
    %4 = arith.mulf %3, %1 : vector<128x128xf32>
    %cst = arith.constant dense<0.000000e+00> : vector<128xf32>
    %5 = vector.multi_reduction <add>, %4, %cst [1] : vector<128x128xf32> to vector<128xf32>
    %6 = vector.shape_cast %5 : vector<128xf32> to vector<128x1xf32>
    %cst_3 = arith.constant 1.000000e+00 : f32
    %7 = vector.broadcast %cst_3 : f32 to vector<8x128xf32>
    %cst_4 = arith.constant dense<0.000000e+00> : vector<8x128xf32>
    %8 = tpu.matmul %7, %4, %cst_4 {dimension_numbers = #tpu.dot_dimension_numbers<[1], [1], [0], [0], [0, 0, 1, 0], [], []>} : vector<8x128xf32>, vector<128x128xf32>, vector<8x128xf32> -> vector<8x128xf32>
    %9 = vector.extract_strided_slice %8 {offsets = [0, 0], sizes = [1, 128], strides = [1, 1]} : vector<8x128xf32> to vector<1x128xf32>
    %cst_5 = arith.constant 0.000000e+00 : f32
    %10 = vector.broadcast %cst_5 : f32 to vector<128x1xf32>
    %11 = arith.cmpf ogt, %6, %10 : vector<128x1xf32>
    %12 = math.rsqrt %6 : vector<128x1xf32>
    %cst_6 = arith.constant 0.000000e+00 : f32
    %13 = vector.broadcast %cst_6 : f32 to vector<128x1xf32>
    %14 = arith.select %11, %12, %13 : vector<128x1xi1>, vector<128x1xf32>
    %cst_7 = arith.constant 0.000000e+00 : f32
    %15 = vector.broadcast %cst_7 : f32 to vector<1x128xf32>
    %16 = arith.cmpf ogt, %9, %15 : vector<1x128xf32>
    %17 = math.rsqrt %9 : vector<1x128xf32>
    %cst_8 = arith.constant 0.000000e+00 : f32
    %18 = vector.broadcast %cst_8 : f32 to vector<1x128xf32>
    %19 = arith.select %16, %17, %18 : vector<1x128xi1>, vector<1x128xf32>
    %20 = arith.mulf %4, %1 : vector<128x128xf32>
    %21 = vector.broadcast %14 : vector<128x1xf32> to vector<128x128xf32>
    %22 = arith.mulf %21, %20 : vector<128x128xf32>
    %23 = vector.broadcast %19 : vector<1x128xf32> to vector<128x128xf32>
    %24 = arith.mulf %22, %23 : vector<128x128xf32>
    %25 = arith.truncf %24 : vector<128x128xf32> to vector<128x128xbf16>
    %c0_9 = arith.constant 0 : index
    %c0_10 = arith.constant 0 : index
    %26 = vector.load %arg2[%c0_9, %c0_10] : memref<128x128xf32, #tpu.memory_space<vmem>>, vector<128x128xf32>
    %27 = arith.truncf %26 : vector<128x128xf32> to vector<128x128xbf16>
    %c0_11 = arith.constant 0 : index
    %c0_12 = arith.constant 0 : index
    %28 = vector.load %arg3[%c0_11, %c0_12] : memref<128x128xbf16, #tpu.memory_space<vmem>>, vector<128x128xbf16>
    %cst_13 = arith.constant dense<0.000000e+00> : vector<128x128xf32>
    %29 = tpu.matmul %27, %28, %cst_13 {dimension_numbers = #tpu.dot_dimension_numbers<[1], [0], [0], [1], [0, 0, 1, 1], [], []>} : vector<128x128xbf16>, vector<128x128xbf16>, vector<128x128xf32> -> vector<128x128xf32>
    %c0_14 = arith.constant 0 : index
    %c0_15 = arith.constant 0 : index
    %30 = vector.load %arg4[%c0_14, %c0_15] : memref<1x128xf32, #tpu.memory_space<vmem>>, vector<1x128xf32>
    %31 = vector.broadcast %30 : vector<1x128xf32> to vector<128x128xf32>
    %32 = arith.addf %29, %31 : vector<128x128xf32>
    %c0_16 = arith.constant 0 : index
    %33 = memref.load %arg1[%c0_16] : memref<5xf32, #tpu.memory_space<smem>>
    %34 = vector.broadcast %33 : f32 to vector<128x128xf32>
    %35 = arith.mulf %34, %32 : vector<128x128xf32>
    %36 = arith.truncf %32 : vector<128x128xf32> to vector<128x128xbf16>
    %cst_17 = arith.constant dense<0.000000e+00> : vector<128x128xf32>
    %37 = tpu.matmul %25, %36, %cst_17 {dimension_numbers = #tpu.dot_dimension_numbers<[1], [0], [0], [1], [0, 0, 1, 1], [], []>} : vector<128x128xbf16>, vector<128x128xbf16>, vector<128x128xf32> -> vector<128x128xf32>
    %38 = arith.truncf %37 : vector<128x128xf32> to vector<128x128xbf16>
    %c1 = arith.constant 1 : index
    %39 = memref.load %arg1[%c1] : memref<5xf32, #tpu.memory_space<smem>>
    %40 = vector.broadcast %39 : f32 to vector<128x128xf32>
    %41 = arith.mulf %40, %37 : vector<128x128xf32>
    %42 = arith.addf %35, %41 : vector<128x128xf32>
    %cst_18 = arith.constant dense<0.000000e+00> : vector<128x128xf32>
    %43 = tpu.matmul %25, %38, %cst_18 {dimension_numbers = #tpu.dot_dimension_numbers<[1], [0], [0], [1], [0, 0, 1, 1], [], []>} : vector<128x128xbf16>, vector<128x128xbf16>, vector<128x128xf32> -> vector<128x128xf32>
    %44 = arith.truncf %43 : vector<128x128xf32> to vector<128x128xbf16>
    %c2 = arith.constant 2 : index
    %45 = memref.load %arg1[%c2] : memref<5xf32, #tpu.memory_space<smem>>
    %46 = vector.broadcast %45 : f32 to vector<128x128xf32>
    %47 = arith.mulf %46, %43 : vector<128x128xf32>
    %48 = arith.addf %42, %47 : vector<128x128xf32>
    %cst_19 = arith.constant dense<0.000000e+00> : vector<128x128xf32>
    %49 = tpu.matmul %25, %44, %cst_19 {dimension_numbers = #tpu.dot_dimension_numbers<[1], [0], [0], [1], [0, 0, 1, 1], [], []>} : vector<128x128xbf16>, vector<128x128xbf16>, vector<128x128xf32> -> vector<128x128xf32>
    %50 = arith.truncf %49 : vector<128x128xf32> to vector<128x128xbf16>
    %c3 = arith.constant 3 : index
    %51 = memref.load %arg1[%c3] : memref<5xf32, #tpu.memory_space<smem>>
    %52 = vector.broadcast %51 : f32 to vector<128x128xf32>
    %53 = arith.mulf %52, %49 : vector<128x128xf32>
    %54 = arith.addf %48, %53 : vector<128x128xf32>
    %cst_20 = arith.constant dense<0.000000e+00> : vector<128x128xf32>
    %55 = tpu.matmul %25, %50, %cst_20 {dimension_numbers = #tpu.dot_dimension_numbers<[1], [0], [0], [1], [0, 0, 1, 1], [], []>} : vector<128x128xbf16>, vector<128x128xbf16>, vector<128x128xf32> -> vector<128x128xf32>
    %c4 = arith.constant 4 : index
    %56 = memref.load %arg1[%c4] : memref<5xf32, #tpu.memory_space<smem>>
    %57 = vector.broadcast %56 : f32 to vector<128x128xf32>
    %58 = arith.mulf %57, %55 : vector<128x128xf32>
    %59 = arith.addf %54, %58 : vector<128x128xf32>
    %c0_21 = arith.constant 0 : index
    %c0_22 = arith.constant 0 : index
    %60 = vector.load %arg7[%c0_21, %c0_22] : memref<128x128xf32, #tpu.memory_space<vmem>>, vector<128x128xf32>
    tpu.vector_store %arg7[%c0_21, %c0_22], %59 {strides = array<i32>} : memref<128x128xf32, #tpu.memory_space<vmem>>, vector<128x128xf32>,
    return
  }
  func.func @transform_0(%arg0: i32, %arg1: memref<5xf32, #tpu.memory_space<smem>>) -> (i32, i32) {
    %c0_i32 = arith.constant 0 : i32
    %c0_i32_0 = arith.constant 0 : i32
    %c0_i32_1 = arith.constant 0 : i32
    return %c0_i32, %c0_i32_0 : i32, i32
  }
  func.func @transform_1(%arg0: i32, %arg1: memref<5xf32, #tpu.memory_space<smem>>) -> (i32, i32) {
    %c0_i32 = arith.constant 0 : i32
    %c0_i32_0 = arith.constant 0 : i32
    %c0_i32_1 = arith.constant 0 : i32
    return %c0_i32, %c0_i32_0 : i32, i32
  }
  func.func @transform_2(%arg0: i32, %arg1: memref<5xf32, #tpu.memory_space<smem>>) -> (i32, i32) {
    %c0_i32 = arith.constant 0 : i32
    %c0_i32_0 = arith.constant 0 : i32
    %c0_i32_1 = arith.constant 0 : i32
    return %c0_i32, %c0_i32_0 : i32, i32
  }
  func.func @transform_3(%arg0: i32, %arg1: memref<5xf32, #tpu.memory_space<smem>>) -> (i32, i32) {
    %c0_i32 = arith.constant 0 : i32
    %c0_i32_0 = arith.constant 0 : i32
    %c0_i32_1 = arith.constant 0 : i32
    return %c0_i32, %c0_i32_0 : i32, i32
  }
  func.func @transform_4(%arg0: i32, %arg1: memref<5xf32, #tpu.memory_space<smem>>) -> (i32, i32) {
    %c0_i32 = arith.constant 0 : i32
    %c0_i32_0 = arith.constant 0 : i32
    %c0_i32_1 = arith.constant 0 : i32
    return %c0_i32, %c0_i32_0 : i32, i32
  }
  func.func @transform_5(%arg0: i32, %arg1: memref<5xf32, #tpu.memory_space<smem>>) -> (i32, i32) {
    %c0_i32 = arith.constant 0 : i32
    %c0_i32_0 = arith.constant 0 : i32
    %c0_i32_1 = arith.constant 0 : i32
    return %c0_i32, %c0_i32_0 : i32, i32
  }
}

</mosaic_0001>

<bundles_post_ra>
// kernel: tpu_custom_call.1
= control target key start
LH: loop header
LB: loop body
LE: loop exit
PB: predicated region body
PF: predicated region fallthrough
CT: control target
= control target key end

     0   :  { %s2490_s0 = inlined_call_operand.hbm [shape: f32[5], index: 0, kind: input, shape index: {}]   ;;  %s2491_s1 = inlined_call_operand.hbm [shape: f32[128,128], index: 1, kind: input, shape index: {}]   ;;  %s2492_s2 = inlined_call_operand.hbm [shape: bf16[128,128], index: 2, kind: input, shape index: {}]   ;;  %s2493_s3 = inlined_call_operand.vmem [shape: f32[1,128], index: 3, kind: input, shape index: {}]   ;;  %s2494_s4 = inlined_call_operand.hbm [shape: s8[128,128], index: 4, kind: input, shape index: {}]   ;;  %s2495_s5 = inlined_call_operand.hbm [shape: bf16[128,128], index: 5, kind: input, shape index: {}]   ;;  %s2496_s6 = inlined_call_operand.hbm [shape: f32[128,128], index: 6, kind: output, shape index: {}]  }
   0x1   :  { %s1620_s23 = scalar_lea.hbm %s2490_s0, 16 }
   0x2   :  { %p1621_p0 = scmp.ne.s32.totalorder %s2490_s0, %s1620_s23  ;;  %p1624_p1 = scmp.lt.u32.totalorder %s1620_s23, %s2490_s0 }
   0x4   :  { %p1626_p2 = pnand %p1624_p1, %p1621_p0 }
   0x6   :  { %1629 = shalt.err (!%p1626_p2)  }
   0x7   :  { %s1750_s28 = smov [#allocation3]  }
   0x8   :  { %12 = dma.hbm_to_smem %s2490_s0, 16, %s1750_s28, [#allocation2] }
   0x9   :  { %1740 = dma.done.wait [#allocation2], 16 }
   0xa   :  { %1741 = vsyncadd [#allocation2], 4294967280 }
   0xb   :  { %14 = sfence }
   0xc   :  { %15 = vsyncpa [#allocation5], 0 }
   0xd   :  { %16 = vsyncpa [#allocation8], 0 }
   0xe   :  { %17 = vsyncpa [#allocation11], 0 }
   0xf   :  { %18 = vsyncpa [#allocation6], 0  ;;  %s1751_s7 = smov [#allocation7]   ;;  %s1630_s11 = scalar_lea.hbm %s2492_s2, 1024 }
  0x10   :  { %s36_s8 = sshll.u32 %s1751_s7, 4  ;;  %p1631_p3 = scmp.ne.s32.totalorder %s2492_s2, %s1630_s11  ;;  %s37_s8 = int_to_ptr.vmem [resolvable:$true] %s36_s8 }
  0x11   :  { %p1634_p4 = scmp.lt.u32.totalorder %s1630_s11, %s2492_s2 }
  0x13   :  { %p1636_p5 = pnand %p1634_p4, %p1631_p3 }
  0x15   :  { %1639 = shalt.err (!%p1636_p5)
}
  0x16   :  { %s1640_s15 = scalar_lea.vmem %s37_s8, 1024  ;;  %p1645_p7 = scmp.lt.s32.totalorder %s37_s8, %s37_s8 }
  0x17   :  { %p1641_p6 = scmp.ne.s32.totalorder %s37_s8, %s1640_s15  ;;  %p1646_p8 = scmp.lt.s32.totalorder %s1640_s15, %s1640_s15 }
  0x19   :  { %p1647_p9 = por %p1646_p8, %p1645_p7 }
  0x1b   :  { %p1648_p10 = pnand %p1647_p9, %p1641_p6 }
  0x1d   :  { %1651 = shalt.err (!%p1648_p10)
}
  0x1e   :  { %s1752_s16 = smov 64   ;;  %s1753_s17 = smov 4  }
  0x1f   :  { %42 = dma.hbm_to_vmem [thread:$0]  %s2492_s2, 1024, %s37_s8, [#allocation8], %s1752_s16, %s1752_s16, %s1753_s17  }
  0x20   :  { %s1754_s20 = smov [#allocation4]   ;;  %s1652_s24 = scalar_lea.hbm %s2491_s1, 2048 }
  0x21   :  { %s24_s21 = sshll.u32 %s1754_s20, 4  ;;  %p1653_p11 = scmp.ne.s32.totalorder %s2491_s1, %s1652_s24  ;;  %s25_s21 = int_to_ptr.vmem [resolvable:$true] %s24_s21 }
  0x22   :  { %p1656_p12 = scmp.lt.u32.totalorder %s1652_s24, %s2491_s1 }
  0x24   :  { %p1658_p13 = pnand %p1656_p12, %p1653_p11 }
  0x26   :  { %1661 = shalt.err (!%p1658_p13)
}
  0x27   :  { %s1662_s29 = scalar_lea.vmem %s25_s21, 2048  ;;  %p1667_p1 = scmp.lt.s32.totalorder %s25_s21, %s25_s21 }
  0x28   :  { %p1663_p0 = scmp.ne.s32.totalorder %s25_s21, %s1662_s29  ;;  %p1668_p2 = scmp.lt.s32.totalorder %s1662_s29, %s1662_s29 }
  0x2a   :  { %p1669_p3 = por %p1668_p2, %p1667_p1 }
  0x2c   :  { %p1670_p4 = pnand %p1669_p3, %p1663_p0 }
  0x2e   :  { %1673 = shalt.err (!%p1670_p4)
}
  0x2f   :  { %s1755_s2 = smov 128   ;;  %s1756_s30 = smov 8  }
  0x30   :  { %30 = dma.hbm_to_vmem [thread:$0]  %s2491_s1, 2048, %s25_s21, [#allocation5], %s1755_s2, %s1755_s2, %s1756_s30  }
  0x31   :  { %s1757_s9 = smov [#allocation9]   ;;  %s1758_s11 = smov [#allocation10]  }
  0x32   :  { %s50_s10 = sshll.u32 %s1757_s9, 4  ;;  %s62_s12 = sshll.u32 %s1758_s11, 4  ;;  %s51_s10 = int_to_ptr.vmem [resolvable:$true] %s50_s10  ;;  %s1841_s12 = int_to_ptr.vmem [resolvable:$true] %s62_s12 }
  0x33   :  { %s1674_s0 = scalar_lea.hbm %s2494_s4, 512 }
  0x34   :  { %p1675_p5 = scmp.ne.s32.totalorder %s2494_s4, %s1674_s0  ;;  %p1678_p6 = scmp.lt.u32.totalorder %s1674_s0, %s2494_s4 }
  0x36   :  { %p1680_p7 = pnand %p1678_p6, %p1675_p5 }
  0x38   :  { %1683 = shalt.err (!%p1680_p7)
}
  0x39   :  { %s1684_s1 = scalar_lea.vmem %s51_s10, 512  ;;  %p1689_p9 = scmp.lt.s32.totalorder %s51_s10, %s51_s10 }
  0x3a   :  { %p1685_p8 = scmp.ne.s32.totalorder %s51_s10, %s1684_s1  ;;  %p1690_p10 = scmp.lt.s32.totalorder %s1684_s1, %s1684_s1 }
  0x3c   :  { %p1691_p11 = por %p1690_p10, %p1689_p9 }
  0x3e   :  { %p1692_p12 = pnand %p1691_p11, %p1685_p8 }
  0x40   :  { %1695 = shalt.err (!%p1692_p12)
}
  0x41   :  { %56 = dma.hbm_to_vmem [thread:$0]  %s2494_s4, 512, %s51_s10, [#allocation8], %s1755_s2, %s1755_s2, %s1756_s30  }
  0x42   :  { %s1696_s25 = scalar_lea.hbm %s2495_s5, 1024 }
  0x43   :  { %p1697_p13 = scmp.ne.s32.totalorder %s2495_s5, %s1696_s25  ;;  %p1700_p0 = scmp.lt.u32.totalorder %s1696_s25, %s2495_s5 }
  0x45   :  { %p1702_p1 = pnand %p1700_p0, %p1697_p13 }
  0x47   :  { %1705 = shalt.err (!%p1702_p1)
}
  0x48   :  { %s1706_s7 = scalar_lea.vmem %s1841_s12, 1024  ;;  %p1711_p3 = scmp.lt.s32.totalorder %s1841_s12, %s1841_s12 }
  0x49   :  { %p1707_p2 = scmp.ne.s32.totalorder %s1841_s12, %s1706_s7  ;;  %p1712_p4 = scmp.lt.s32.totalorder %s1706_s7, %s1706_s7 }
  0x4b   :  { %p1713_p5 = por %p1712_p4, %p1711_p3 }
  0x4d   :  { %p1714_p6 = pnand %p1713_p5, %p1707_p2 }
  0x4f   :  { %1717 = shalt.err (!%p1714_p6)
}
  0x50   :  { %68 = dma.hbm_to_vmem [thread:$0]  %s2495_s5, 1024, %s1841_s12, [#allocation11], %s1752_s16, %s1752_s16, %s1753_s17  }
  0x51   :  { %1742 = dma.done.wait [#allocation5], 2048  }
  0x52   :  { %1743 = vsyncadd [#allocation5], 4294965248 }
  0x53   :  { %1744 = dma.done.wait [#allocation8], 1536  }
  0x54   :  { %1745 = vsyncadd [#allocation8], 4294965760 }
  0x55   :  { %1746 = dma.done.wait [#allocation11], 1024  }
  0x56   :  { %1747 = vsyncadd [#allocation11], 4294966272  ;;  %v1759_v0 = vmov 0.0|0.0   ;;  %vm1760_vm0 = vmmov 0   ;;  %v1761_v1 = vmov 0.0   ;;  %v1879_v2 = vld [vmem:[#allocation10] sm:$0xff]  }
  0x57   :  { %1524 = vmatprep.subr.bf16.mxu0 %v1759_v0  ;;  %1361 = vmatprep.mubr.msk.f32.mxu0 %vm1760_vm0, %v1761_v1  ;;  %v114_v3 = vld [vmem:[#allocation9] sm:$0xff]  ;;  %v1195_v4 = vunpack.c.l.bf16 %v1879_v2  ;;  %v1196_v5 = vunpack.c.h.bf16 %v1879_v2  ;;  %v1579_v9 = vld [vmem:[#allocation7 + $0x8] sm:$0xff]   ;;  %v1580_v21 = vld [vmem:[#allocation7 + $0x10] sm:$0xff]   ;;  %s1189_s17 = sld [smem:[#allocation3 + $0x1]]  ;;  %s1190_s9 = sld [smem:[#allocation3 + $0x2]] }
  0x58   :  { %v118_v6 = vunpack.c.0.s8 %v114_v3  ;;  %v119_v7 = vunpack.c.1.s8 %v114_v3  ;;  %v1578_v8 = vld [vmem:[#allocation7] sm:$0xff]   ;;  %v1883_v10 = vld [vmem:[#allocation10 + $0x8] sm:$0xff]   ;;  %v120_v11 = vunpack.c.2.s8 %v114_v3  ;;  %v121_v12 = vunpack.c.3.s8 %v114_v3  ;;  %v1899_v24 = vld [vmem:[#allocation10 + $0x10] sm:$0xff]   ;;  %s1191_s10 = sld [smem:[#allocation3 + $0x3]]  ;;  %s1192_s11 = sld [smem:[#allocation3 + $0x4]] }
  0x59   :  { %1364 = vmatprep.subr.bf16.mxu1 %v1578_v8  ;;  %v1199_v15 = vunpack.c.l.bf16 %v1883_v10  ;;  %v1200_v16 = vunpack.c.h.bf16 %v1883_v10  ;;  %v115_v22 = vld [vmem:[#allocation9 + $0x8] sm:$0xff]  ;;  %v1581_v29 = vld [vmem:[#allocation7 + $0x18] sm:$0xff]   ;;  %v2507_v30 = vunpack.c.l.bf16 %v1899_v24  ;;  %v2508_v34 = vunpack.c.h.bf16 %v1899_v24  ;;  %v116_v37 = vld [vmem:[#allocation9 + $0x10] sm:$0xff]  ;;  %s1763_s12 = smov [#allocation12]  }
  0x5a   :  { %v134_v13 = vcvt.s32.f32 %v118_v6  ;;  %v135_v14 = vcvt.s32.f32 %v119_v7  ;;  %1365 = vmatpush3.bf16.msra.mxu1 %v1578_v8  ;;  %v136_v17 = vcvt.s32.f32 %v120_v11  ;;  %v137_v18 = vcvt.s32.f32 %v121_v12  ;;  %v1910_v32 = vld [vmem:[#allocation10 + $0x18] sm:$0xff]   ;;  %v379_v38 = vld [vmem:[#allocation4] sm:$0xff]  ;;  %v380_v39 = vld [vmem:[#allocation4 + $0x8] sm:$0xff]  ;;  %s1166_s13 = sshll.u32 %s1763_s12, 4  ;;  %s1167_s13 = int_to_ptr.vmem [resolvable:$true] %s1166_s13 }
  0x5b   :  { %1366 = vmatprep.subr.bf16.mxu1 %v1579_v9  ;;  %v122_v26 = vunpack.c.0.s8 %v115_v22  ;;  %v123_v27 = vunpack.c.1.s8 %v115_v22  ;;  %v124_v33 = vunpack.c.2.s8 %v115_v22  ;;  %v125_v36 = vunpack.c.3.s8 %v115_v22  ;;  %v1582_v43 = vld [vmem:[#allocation7 + $0x20] sm:$0xff]   ;;  %v1583_v52 = vld [vmem:[#allocation7 + $0x28] sm:$0xff]   ;;  %v117_v62 = vld [vmem:[#allocation9 + $0x18] sm:$0xff]  ;;  %s1718_s14 = scalar_lea.vmem %s1167_s13, 2048  ;;  %p1723_p8 = scmp.lt.s32.totalorder %s1167_s13, %s1167_s13 }
  0x5c   :  { %v1889_v19 = vmul.f32 %v1195_v4, %v134_v13  ;;  %v1893_v20 = vmul.f32 %v1196_v5, %v135_v14  ;;  %v1897_v23 = vmul.f32 %v1199_v15, %v136_v17  ;;  %v1906_v28 = vmul.f32 %v1200_v16, %v137_v18  ;;  %v1928_v50 = vld [vmem:[#allocation10 + $0x20] sm:$0xff]   ;;  %v1943_v60 = vld [vmem:[#allocation10 + $0x28] sm:$0xff]   ;;  %v1584_v1 = vld [vmem:[#allocation7 + $0x30] sm:$0xff]   ;;  %p1719_p7 = scmp.ne.s32.totalorder %s1167_s13, %s1718_s14  ;;  %p1724_p9 = scmp.lt.s32.totalorder %s1718_s14, %s1718_s14 }
  0x5d   :  { %v138_v31 = vcvt.s32.f32 %v122_v26  ;;  %v139_v35 = vcvt.s32.f32 %v123_v27  ;;  %v2505_v41 = vunpack.c.l.bf16 %v1910_v32  ;;  %v140_v44 = vcvt.s32.f32 %v124_v33  ;;  %v1959_v13 = vld [vmem:[#allocation10 + $0x30] sm:$0xff]   ;;  %v1585_v17 = vld [vmem:[#allocation7 + $0x38] sm:$0xff]  }
  0x5e   :  { %v1525_v25 = vpack.c.bf16 %v1893_v20, %v1889_v19  ;;  %166 = vadd.xlane.f32.xlu0 %v1889_v19  ;;  %1367 = vmatpush3.bf16.msra.mxu1 %v1579_v9  ;;  %v1528_v40 = vpack.c.bf16 %v1906_v28, %v1897_v23  ;;  %v126_v45 = vunpack.c.0.s8 %v116_v37  ;;  %v395_v46 = vpack.c.bf16 %v380_v39, %v379_v38  ;;  %v383_v38 = vld [vmem:[#allocation4 + $0x20] sm:$0xff]  ;;  %v384_v39 = vld [vmem:[#allocation4 + $0x28] sm:$0xff]  ;;  %p1725_p10 = por %p1724_p9, %p1723_p8 }
  0x5f   :  { %170 = vadd.xlane.f32.xlu1 %v1897_v23  ;;  %1368 = vmatprep.subr.bf16.mxu1 %v1580_v21  ;;  %v1921_v42 = vmul.f32 %v2507_v30, %v138_v31  ;;  %v1925_v47 = vmul.f32 %v2508_v34, %v139_v35  ;;  %v2506_v48 = vunpack.c.h.bf16 %v1910_v32  ;;  %v141_v49 = vcvt.s32.f32 %v125_v36  ;;  %v1974_v31 = vld [vmem:[#allocation10 + $0x38] sm:$0xff]   ;;  %v381_v35 = vld [vmem:[#allocation4 + $0x10] sm:$0xff] }
  0x60   :  { %1526 = vmatpush3.bf16.xpose.msra.mxu0 %v1525_v25  ;;  %v127_v51 = vunpack.c.1.s8 %v116_v37  ;;  %1380 = vmatprep.mubr.bf16.mxu1 %v395_v46  ;;  %v1934_v53 = vmul.f32 %v2505_v41, %v140_v44  ;;  %v2503_v54 = vunpack.c.l.bf16 %v1928_v50  ;;  %v142_v55 = vcvt.s32.f32 %v126_v45  ;;  %v382_v36 = vld [vmem:[#allocation4 + $0x18] sm:$0xff]  ;;  %p1726_p11 = pnand %p1725_p10, %p1719_p7 }
  0x61   :  { %1527 = vmatprep.subr.bf16.mxu0 %v1759_v0  ;;  %v128_v56 = vunpack.c.2.s8 %v116_v37  ;;  %v1940_v57 = vmul.f32 %v2506_v48, %v141_v49  ;;  %v2504_v58 = vunpack.c.h.bf16 %v1928_v50  ;;  %v129_v61 = vunpack.c.3.s8 %v116_v37 }
  0x62   :  { %168 = vadd.xlane.f32.xlu0 %v1893_v20  ;;  %1369 = vmatpush3.bf16.msra.mxu1 %v1580_v21  ;;  %v143_v59 = vcvt.s32.f32 %v127_v51  ;;  %v1531_v63 = vpack.c.bf16 %v1925_v47, %v1921_v42  ;;  %v1951_v3 = vmul.f32 %v2503_v54, %v142_v55  ;;  %v2501_v6 = vunpack.c.l.bf16 %v1943_v60 }
  0x63   :  { %172 = vadd.xlane.f32.xlu1 %v1906_v28  ;;  %1370 = vmatprep.subr.bf16.mxu1 %v1581_v29  ;;  %v144_v7 = vcvt.s32.f32 %v128_v56  ;;  %v130_v8 = vunpack.c.0.s8 %v117_v62  ;;  %v2502_v11 = vunpack.c.h.bf16 %v1943_v60  ;;  %v145_v12 = vcvt.s32.f32 %v129_v61  ;;  %v386_v61 = vld [vmem:[#allocation4 + $0x38] sm:$0xff] }
  0x64   :  { %v1956_v9 = vmul.f32 %v2504_v58, %v143_v59  ;;  %v131_v14 = vunpack.c.1.s8 %v117_v62  ;;  %v2499_v21 = vunpack.c.l.bf16 %v1959_v13  ;;  %v132_v25 = vunpack.c.2.s8 %v117_v62  ;;  %v385_v59 = vld [vmem:[#allocation4 + $0x30] sm:$0xff] }
  0x65   :  { %v1965_v18 = vmul.f32 %v2501_v6, %v144_v7  ;;  %v146_v22 = vcvt.s32.f32 %v130_v8  ;;  %v1971_v26 = vmul.f32 %v2502_v11, %v145_v12  ;;  %v2500_v27 = vunpack.c.h.bf16 %v1959_v13  ;;  %v389_v12 = vld [vmem:[#allocation4 + $0x50] sm:$0xff] }
  0x66   :  { %174 = vadd.xlane.f32.xlu0 %v1921_v42  ;;  %1371 = vmatpush3.bf16.msra.mxu1 %v1581_v29  ;;  %v147_v29 = vcvt.s32.f32 %v131_v14  ;;  %v133_v33 = vunpack.c.3.s8 %v117_v62  ;;  %v1534_v37 = vpack.c.bf16 %v1940_v57, %v1934_v53  ;;  %v148_v44 = vcvt.s32.f32 %v132_v25  ;;  %v390_v14 = vld [vmem:[#allocation4 + $0x58] sm:$0xff]  ;;  %v392_v25 = vld [vmem:[#allocation4 + $0x68] sm:$0xff] }
  0x67   :  { %176 = vadd.xlane.f32.xlu1 %v1925_v47  ;;  %1372 = vmatprep.subr.bf16.mxu1 %v1582_v43  ;;  %v2498_v46 = vunpack.c.h.bf16 %v1974_v31  ;;  %v396_v51 = vpack.c.bf16 %v382_v36, %v381_v35  ;;  %v1537_v62 = vpack.c.bf16 %v1956_v9, %v1951_v3  ;;  %v398_v7 = vpack.c.bf16 %v386_v61, %v385_v59  ;;  %v393_v35 = vld [vmem:[#allocation4 + $0x70] sm:$0xff]  ;;  %v394_v36 = vld [vmem:[#allocation4 + $0x78] sm:$0xff] }
  0x68   :  { %1529 = vmatpush3.bf16.xpose.msra.mxu0 %v1528_v40  ;;  %v1982_v40 = vmul.f32 %v2499_v21, %v146_v22  ;;  %v1987_v45 = vmul.f32 %v2500_v27, %v147_v29  ;;  %v149_v49 = vcvt.s32.f32 %v133_v33  ;;  %v391_v22 = vld [vmem:[#allocation4 + $0x60] sm:$0xff]  ;;  %v400_v29 = vpack.c.bf16 %v390_v14, %v389_v12 }
  0x69   :  { %1530 = vmatprep.subr.bf16.mxu0 %v1759_v0  ;;  %v401_v33 = vpack.c.bf16 %v392_v25, %v391_v22  ;;  %v321_v30 = vmul.f32 %v1199_v15, %v1897_v23 }
  0x6a   :  { %178 = vadd.xlane.f32.xlu0 %v1934_v53  ;;  %1373 = vmatpush3.bf16.msra.mxu1 %v1582_v43  ;;  %v2497_v43 = vunpack.c.l.bf16 %v1974_v31  ;;  %v1999_v56 = vmul.f32 %v2498_v46, %v149_v49  ;;  %v1180_v49 = vld [vmem:[%s2493_s3] ss:$0 sm:$0xff]  ;;  %s571_s3 = sld [smem:[#allocation3]] }
  0x6b   :  { %180 = vadd.xlane.f32.xlu1 %v1940_v57  ;;  %1374 = vmatprep.subr.bf16.mxu1 %v1583_v52 }
  0x6c   :  { %v1994_v55 = vmul.f32 %v2497_v43, %v148_v44  ;;  %v1762_v44 = vmov 1.0  }
  0x6e   :  { %182 = vadd.xlane.f32.xlu0 %v1951_v3  ;;  %1375 = vmatpush3.bf16.msra.mxu1 %v1583_v52  ;;  %v397_v52 = vpack.c.bf16 %v384_v39, %v383_v38  ;;  %v402_v38 = vpack.c.bf16 %v394_v36, %v393_v35  ;;  %v1546_v39 = vpack.c.bf16 %v1999_v56, %v1994_v55 }
  0x6f   :  { %184 = vadd.xlane.f32.xlu1 %v1956_v9  ;;  %1376 = vmatprep.subr.bf16.mxu1 %v1584_v1 }
  0x70   :  { %1532 = vmatpush3.bf16.xpose.msra.mxu0 %v1531_v63  ;;  %v387_v63 = vld [vmem:[#allocation4 + $0x40] sm:$0xff] }
  0x71   :  { %1533 = vmatprep.subr.bf16.mxu0 %v1759_v0 }
  0x72   :  { %186 = vadd.xlane.f32.xlu0 %v1965_v18  ;;  %1377 = vmatpush3.bf16.msra.mxu1 %v1584_v1  ;;  %v388_v1 = vld [vmem:[#allocation4 + $0x48] sm:$0xff] }
  0x73   :  { %188 = vadd.xlane.f32.xlu1 %v1971_v26  ;;  %1378 = vmatprep.subr.bf16.mxu1 %v1585_v17  ;;  %v399_v8 = vpack.c.bf16 %v388_v1, %v387_v63 }
  0x76   :  { %190 = vadd.xlane.f32.xlu0 %v1982_v40  ;;  %1379 = vmatpush3.bf16.msra.mxu1 %v1585_v17  ;;  %v1540_v17 = vpack.c.bf16 %v1971_v26, %v1965_v18 }
  0x77   :  { %192 = vadd.xlane.f32.xlu1 %v1987_v45 }
  0x78   :  { %1535 = vmatpush3.bf16.xpose.msra.mxu0 %v1534_v37  ;;  %v1543_v37 = vpack.c.bf16 %v1987_v45, %v1982_v40 }
  0x79   :  { %1536 = vmatprep.subr.bf16.mxu0 %v1759_v0  ;;  %1381 = vmatmul.mubr.bf16.vlgmr.msra.gmra.mrb[0].mxu1 %v396_v51 }
  0x7a   :  { %194 = vadd.xlane.f32.xlu0 %v1994_v55  ;;  %1384 = vmatprep.mubr.bf16.mxu1 %v397_v52 }
  0x7b   :  { %196 = vadd.xlane.f32.xlu1 %v1999_v56 }
  0x80   :  { %1538 = vmatpush3.bf16.xpose.msra.mxu0 %v1537_v62 }
  0x81   :  { %1539 = vmatprep.subr.bf16.mxu0 %v1759_v0  ;;  %1385 = vmatmul.mubr.bf16.gmra.mrb[4].mxu1 %v398_v7 }
  0x82   :  { %1388 = vmatprep.mubr.bf16.mxu1 %v399_v8 }
  0x88   :  { %1541 = vmatpush3.bf16.xpose.msra.mxu0 %v1540_v17 }
  0x89   :  { %1542 = vmatprep.subr.bf16.mxu0 %v1759_v0  ;;  %1389 = vmatmul.mubr.bf16.gmra.mrb[8].mxu1 %v400_v29 }
  0x8a   :  { %1392 = vmatprep.mubr.bf16.mxu1 %v401_v33 }
  0x90   :  { %1544 = vmatpush3.bf16.xpose.msra.mxu0 %v1543_v37 }
  0x91   :  { %1545 = vmatprep.subr.bf16.mxu0 %v1759_v0  ;;  %1393 = vmatmul.mubr.bf16.gmra.mrb[12].mxu1 %v402_v38 }
  0x98   :  { %1547 = vmatpush3.bf16.xpose.msra.mxu0 %v1546_v39 }
  0x9f   :  { %1362 = vmatmul.mubr.f32.vlgmr.msra.gmra.mrb[0].mxu0 %v1762_v44 }
  0xeb   :  { %v2029_v14 = vpop.xlane.xlu0 %166 }
  0xec   :  { %v2033_v25 = vpop.xlane.xlu1 %170  ;;  %1586 = vrsqrt.f32 %v2029_v14  ;;  %vm268_vm1 = vcmp.gt.f32.partialorder %v2029_v14, 0.0 }
  0xed   :  { %1588 = vrsqrt.f32 %v2033_v25  ;;  %vm270_vm2 = vcmp.gt.f32.partialorder %v2033_v25, 0.0 }
  0xef   :  { %v2045_v44 = vpop.xlane.xlu0 %168 }
  0xf0   :  { %1590 = vrsqrt.f32 %v2045_v44  ;;  %vm269_vm3 = vcmp.gt.f32.partialorder %v2045_v44, 0.0 }
 0x14c   :  { %v1382_v51 = vpop.f32.mrb[0].mxu1 }
 0x14d   :  { %v2017_v52 = vadd.f32 %v1382_v51, %v1180_v49  ;;  %v508_v59 = vpop.f32.mrb[1].mxu1  ;;  %v2047_v51 = vpop.xlane.xlu1 %172 }
 0x14e   :  { %v2019_v61 = vadd.f32 %v1180_v49, %v508_v59  ;;  %v1383_v62 = vpop.f32.mrb[2].mxu1  ;;  %1592 = vrsqrt.f32 %v2047_v51  ;;  %vm271_vm4 = vcmp.gt.f32.partialorder %v2047_v51, 0.0 }
 0x14f   :  { %v2021_v63 = vadd.f32 %v1383_v62, %v1180_v49  ;;  %v511_v0 = vpop.f32.mrb[3].mxu1 }
 0x150   :  { %v2023_v1 = vadd.f32 %v1180_v49, %v511_v0 }
 0x151   :  { %v590_v7 = vpack.c.bf16 %v2021_v63, %v2017_v52  ;;  %v2061_v46 = vpop.xlane.xlu1 %176 }
 0x152   :  { %v589_v8 = vpack.c.bf16 %v2023_v1, %v2019_v61  ;;  %vm273_vm5 = vcmp.gt.f32.partialorder %v2061_v46, 0.0 }
 0x154   :  { %v1386_v12 = vpop.f32.mrb[4].mxu1  ;;  %1396 = vmatprep.subr.bf16.mxu1 %v589_v8 }
 0x155   :  { %v2031_v17 = vadd.f32 %v1386_v12, %v1180_v49  ;;  %v524_v22 = vpop.f32.mrb[5].mxu1  ;;  %1397 = vmatpush3.bf16.msra.mxu1 %v589_v8  ;;  %v2073_v11 = vpop.xlane.xlu1 %180 }
 0x156   :  { %v2035_v29 = vadd.f32 %v1180_v49, %v524_v22  ;;  %v1387_v33 = vpop.f32.mrb[6].mxu1  ;;  %1398 = vmatprep.subr.bf16.mxu1 %v590_v7  ;;  %vm275_vm7 = vcmp.gt.f32.partialorder %v2073_v11, 0.0 }
 0x157   :  { %v2037_v35 = vadd.f32 %v1387_v33, %v1180_v49  ;;  %v527_v36 = vpop.f32.mrb[7].mxu1 }
 0x158   :  { %v2039_v37 = vadd.f32 %v1180_v49, %v527_v36  ;;  %v2057_v36 = vpop.xlane.xlu0 %174 }
 0x159   :  { %v592_v38 = vpack.c.bf16 %v2037_v35, %v2031_v17  ;;  %1399 = vmatpush3.bf16.msra.mxu1 %v590_v7  ;;  %1594 = vrsqrt.f32 %v2057_v36  ;;  %vm272_vm6 = vcmp.gt.f32.partialorder %v2057_v36, 0.0 }
 0x15a   :  { %v591_v39 = vpack.c.bf16 %v2039_v37, %v2035_v29  ;;  %1596 = vrsqrt.f32 %v2061_v46 }
 0x15c   :  { %v1390_v59 = vpop.f32.mrb[8].mxu1  ;;  %1400 = vmatprep.subr.bf16.mxu1 %v591_v39  ;;  %v2069_v27 = vpop.xlane.xlu0 %178 }
 0x15d   :  { %v2049_v62 = vadd.f32 %v1390_v59, %v1180_v49  ;;  %v540_v0 = vpop.f32.mrb[9].mxu1  ;;  %1401 = vmatpush3.bf16.msra.mxu1 %v591_v39  ;;  %1598 = vrsqrt.f32 %v2069_v27  ;;  %vm274_vm8 = vcmp.gt.f32.partialorder %v2069_v27, 0.0 }
 0x15e   :  { %v2051_v8 = vadd.f32 %v1180_v49, %v540_v0  ;;  %v1391_v12 = vpop.f32.mrb[10].mxu1  ;;  %1402 = vmatprep.subr.bf16.mxu1 %v592_v38  ;;  %1600 = vrsqrt.f32 %v2073_v11 }
 0x15f   :  { %v2053_v22 = vadd.f32 %v1391_v12, %v1180_v49  ;;  %v543_v7 = vpop.f32.mrb[11].mxu1 }
 0x160   :  { %v2055_v33 = vadd.f32 %v1180_v49, %v543_v7 }
 0x161   :  { %v594_v43 = vpack.c.bf16 %v2053_v22, %v2049_v62  ;;  %1403 = vmatpush3.bf16.msra.mxu1 %v592_v38 }
 0x162   :  { %v593_v39 = vpack.c.bf16 %v2055_v33, %v2051_v8 }
 0x164   :  { %v1394_v59 = vpop.f32.mrb[12].mxu1  ;;  %1404 = vmatprep.subr.bf16.mxu1 %v593_v39 }
 0x165   :  { %v2065_v0 = vadd.f32 %v1394_v59, %v1180_v49  ;;  %v556_v12 = vpop.f32.mrb[13].mxu1  ;;  %1405 = vmatpush3.bf16.msra.mxu1 %v593_v39  ;;  %v2085_v59 = vpop.xlane.xlu0 %182 }
 0x166   :  { %v2067_v21 = vadd.f32 %v1180_v49, %v556_v12  ;;  %v1395_v7 = vpop.f32.mrb[14].mxu1  ;;  %1406 = vmatprep.subr.bf16.mxu1 %v594_v43  ;;  %v351_v12 = vlaneseq  ;;  %vm276_vm11 = vcmp.gt.f32.partialorder %v2085_v59, 0.0 }
 0x167   :  { %v2071_v6 = vadd.f32 %v1395_v7, %v1180_v49  ;;  %v559_v38 = vpop.f32.mrb[15].mxu1 }
 0x168   :  { %2512 = vst [vmem:[#allocation18_spill] sm:$0xff] %v2067_v21  ;;  %v2075_v54 = vadd.f32 %v1180_v49, %v559_v38  ;;  %v2088_v49 = vpop.xlane.xlu1 %184  ;;  %v352_v15 = vshrl.u32 %v351_v12, 7 }
 0x169   :  { %2513 = vst [vmem:[#allocation19_spill] sm:$0xff] %v2071_v6  ;;  %v596_v58 = vpack.c.bf16 %v2071_v6, %v2065_v0  ;;  %1407 = vmatpush3.bf16.msra.mxu1 %v594_v43  ;;  %v2094_v38 = vpop.xlane.xlu0 %186  ;;  %v2515_v6 = vunpack.c.h.bf16 %v1899_v24  ;;  %vm277_vm10 = vcmp.gt.f32.partialorder %v2088_v49, 0.0 }
 0x16a   :  { %2514 = vst [vmem:[#allocation20_spill] sm:$0xff] %v2075_v54  ;;  %v595_v39 = vpack.c.bf16 %v2075_v54, %v2067_v21  ;;  %v320_v54 = vmul.f32 %v1196_v5, %v1893_v20  ;;  %v2518_v5 = vunpack.c.l.bf16 %v1910_v32  ;;  %vm278_vm13 = vcmp.gt.f32.partialorder %v2094_v38, 0.0 }
 0x16b   :  { %v324_v21 = vmul.f32 %v2515_v6, %v1925_v47  ;;  %v2520_v6 = vunpack.c.l.bf16 %v1928_v50 }
 0x16c   :  { %1408 = vmatprep.subr.bf16.mxu1 %v595_v39  ;;  %v2097_v41 = vpop.xlane.xlu1 %188  ;;  %v325_v20 = vmul.f32 %v2518_v5, %v1934_v53 }
 0x16d   :  { %1409 = vmatpush3.bf16.msra.mxu1 %v595_v39  ;;  %v1587_v39 = vpop.eup %1586  ;;  %vm279_vm12 = vcmp.gt.f32.partialorder %v2097_v41, 0.0 }
 0x16e   :  { %1410 = vmatprep.subr.bf16.mxu1 %v596_v58  ;;  %v1589_v48 = vpop.eup %1588  ;;  %v300_v14 = vsel %vm268_vm1, %v1587_v39, 0.0 }
 0x16f   :  { %v1591_v34 = vpop.eup %1590  ;;  %v302_v53 = vsel %vm270_vm2, %v1589_v48, 0.0 }
 0x170   :  { %v1593_v23 = vpop.eup %1592 }
 0x171   :  { %1411 = vmatpush3.bf16.msra.mxu1 %v596_v58  ;;  %v319_v58 = vmul.f32 %v1195_v4, %v1889_v19  ;;  %v2516_v4 = vunpack.c.l.bf16 %v1899_v24  ;;  %v1595_v2 = vpop.eup %1594  ;;  %v327_v24 = vmul.f32 %v2520_v6, %v1951_v3  ;;  %v353_v3 = vsub.s32 0, %v352_v15 }
 0x172   :  { %v264_v43 = vpop.f32.mrb[0].mxu0  ;;  %v303_v39 = vsel %vm271_vm4, %v1593_v23, 0.0  ;;  %v337_v15 = vmul.f32 %v321_v30, %v302_v53 }
 0x173   :  { %1602 = vrsqrt.f32 %v264_v43  ;;  %v1363_v7 = vpop.f32.mrb[1].mxu0  ;;  %v323_v10 = vmul.f32 %v2516_v4, %v1921_v42  ;;  %v1597_v42 = vpop.eup %1596  ;;  %vm316_vm9 = vcmp.gt.f32.partialorder %v264_v43, 0.0  ;;  %v335_v51 = vmul.f32 %v319_v58, %v300_v14 }
 0x174   :  { %1604 = vrsqrt.f32 %v2085_v59  ;;  %v322_v7 = vmul.f32 %v1200_v16, %v1906_v28  ;;  %v2517_v16 = vunpack.c.h.bf16 %v1910_v32  ;;  %v2519_v28 = vunpack.c.h.bf16 %v1928_v50  ;;  %v1599_v32 = vpop.eup %1598  ;;  %v2143_v50 = vpop.xlane.xlu1 %192 }
 0x175   :  { %1606 = vrsqrt.f32 %v2088_v49  ;;  %v1601_v12 = vpop.eup %1600  ;;  %v305_v48 = vsel %vm273_vm5, %v1597_v42, 0.0  ;;  %v306_v43 = vsel %vm274_vm8, %v1599_v32, 0.0  ;;  %vm281_vm14 = vcmp.gt.f32.partialorder %v2143_v50, 0.0 }
 0x176   :  { %v326_v19 = vmul.f32 %v2517_v16, %v1940_v57  ;;  %v328_v47 = vmul.f32 %v2519_v28, %v1956_v9  ;;  %1608 = vrsqrt.f32 %v2094_v38  ;;  %v2136_v57 = vpop.xlane.xlu0 %190  ;;  %v301_v9 = vsel %vm269_vm3, %v1591_v34, 0.0 }
 0x177   :  { %1610 = vrsqrt.f32 %v2097_v41  ;;  %v304_v34 = vsel %vm272_vm6, %v1595_v2, 0.0  ;;  %v336_v23 = vmul.f32 %v320_v54, %v301_v9  ;;  %v338_v5 = vmul.f32 %v322_v7, %v303_v39 }
 0x178   :  { %1612 = vrsqrt.f32 %v2136_v57  ;;  %v340_v46 = vmul.f32 %v324_v21, %v305_v48  ;;  %v339_v6 = vmul.f32 %v323_v10, %v304_v34  ;;  %v307_v36 = vsel %vm275_vm7, %v1601_v12, 0.0  ;;  %v197_v58 = vpop.xlane.xlu1 %196 }
 0x179   :  { %1614 = vrsqrt.f32 %v2143_v50  ;;  %v342_v32 = vmul.f32 %v326_v19, %v307_v36  ;;  %v341_v53 = vmul.f32 %v325_v20, %v306_v43  ;;  %v2521_v19 = vunpack.c.h.bf16 %v1943_v60 }
 0x17a   :  { %v195_v30 = vpop.xlane.xlu0 %194  ;;  %vm280_vm15 = vcmp.gt.f32.partialorder %v2136_v57, 0.0  ;;  %v2523_v41 = vunpack.c.h.bf16 %v1959_v13  ;;  %v2524_v34 = vunpack.c.l.bf16 %v1959_v13  ;;  %vm283_vm0 = vcmp.gt.f32.partialorder %v197_v58, 0.0 }
 0x17b   :  { %1616 = vrsqrt.f32 %v195_v30  ;;  %v330_v20 = vmul.f32 %v2521_v19, %v1971_v26  ;;  %vm282_vm1 = vcmp.gt.f32.partialorder %v195_v30, 0.0  ;;  %v2525_v36 = vunpack.c.h.bf16 %v1974_v31 }
 0x17c   :  { %1618 = vrsqrt.f32 %v197_v58  ;;  %v332_v38 = vmul.f32 %v2523_v41, %v1987_v45 }
 0x17d   :  { %v1603_v25 = vpop.eup %1602  ;;  %v334_v43 = vmul.f32 %v2525_v36, %v1999_v56 }
 0x17e   :  { %v1605_v44 = vpop.eup %1604  ;;  %v318_v4 = vsel %vm316_vm9, %v1603_v25, 0.0 }
 0x17f   :  { %v1607_v16 = vpop.eup %1606  ;;  %v2157_v28 = vrot.slane %v318_v4, %v353_v3  ;;  %v308_v42 = vsel %vm276_vm11, %v1605_v44, 0.0  ;;  %v331_v44 = vmul.f32 %v2524_v34, %v1982_v40 }
 0x180   :  { %v309_v2 = vsel %vm277_vm10, %v1607_v16, 0.0  ;;  %v1609_v14 = vpop.eup %1608  ;;  %v343_v12 = vmul.f32 %v327_v24, %v308_v42 }
 0x181   :  { %v355_v54 = vmul.f32 %v2157_v28, %v335_v51  ;;  %v356_v7 = vmul.f32 %v2157_v28, %v336_v23  ;;  %v357_v49 = vmul.f32 %v2157_v28, %v337_v15  ;;  %v358_v59 = vmul.f32 %v2157_v28, %v338_v5  ;;  %v1611_v9 = vpop.eup %1610 }
 0x182   :  { %v359_v21 = vmul.f32 %v2157_v28, %v339_v6  ;;  %v360_v11 = vmul.f32 %v2157_v28, %v340_v46  ;;  %v344_v3 = vmul.f32 %v328_v47, %v309_v2  ;;  %v1613_v25 = vpop.eup %1612  ;;  %v2522_v47 = vunpack.c.l.bf16 %v1943_v60 }
 0x183   :  { %v2169_v10 = vpack.c.bf16 %v356_v7, %v355_v54  ;;  %v2171_v27 = vpack.c.bf16 %v358_v59, %v357_v49  ;;  %v1615_v48 = vpop.eup %1614  ;;  %v361_v26 = vmul.f32 %v2157_v28, %v341_v53  ;;  %v362_v15 = vmul.f32 %v2157_v28, %v342_v32 }
 0x184   :  { %v2175_v39 = vpack.c.bf16 %v360_v11, %v359_v21  ;;  %v329_v24 = vmul.f32 %v2522_v47, %v1965_v18  ;;  %v311_v60 = vsel %vm279_vm12, %v1611_v9, 0.0  ;;  %v310_v18 = vsel %vm278_vm13, %v1609_v14, 0.0 }
 0x185   :  { %1412 = vmatprep.mubr.bf16.mxu1 %v2169_v10  ;;  %1444 = vmatprep.mubr.bf16.mxu0 %v2169_v10  ;;  %v363_v50 = vmul.f32 %v2157_v28, %v343_v12  ;;  %v364_v57 = vmul.f32 %v2157_v28, %v344_v3  ;;  %v313_v51 = vsel %vm281_vm14, %v1615_v48, 0.0  ;;  %v312_v23 = vsel %vm280_vm15, %v1613_v25, 0.0  ;;  %v1617_v45 = vpop.eup %1616 }
 0x186   :  { %1413 = vmatmul.mubr.bf16.vlgmr.msra.gmra.mrb[16].mxu1 %v2171_v27  ;;  %v346_v4 = vmul.f32 %v330_v20, %v311_v60  ;;  %v345_v16 = vmul.f32 %v329_v24, %v310_v18  ;;  %v2199_v5 = vpack.c.bf16 %v362_v15, %v361_v26  ;;  %v348_v46 = vmul.f32 %v332_v38, %v313_v51  ;;  %v1619_v6 = vpop.eup %1618 }
 0x187   :  { %1416 = vmatprep.mubr.bf16.mxu1 %v2175_v39  ;;  %v347_v13 = vmul.f32 %v331_v44, %v312_v23  ;;  %v2201_v40 = vpack.c.bf16 %v364_v57, %v363_v50  ;;  %v2526_v54 = vunpack.c.l.bf16 %v1974_v31  ;;  %v315_v2 = vsel %vm283_vm0, %v1619_v6, 0.0 }
 0x188   :  { %v365_v49 = vmul.f32 %v2157_v28, %v345_v16  ;;  %v366_v59 = vmul.f32 %v2157_v28, %v346_v4  ;;  %v314_v42 = vsel %vm282_vm1, %v1617_v45, 0.0  ;;  %v368_v58 = vmul.f32 %v2157_v28, %v348_v46 }
 0x189   :  { %v333_v7 = vmul.f32 %v2526_v54, %v1994_v55  ;;  %v367_v30 = vmul.f32 %v2157_v28, %v347_v13  ;;  %v350_v21 = vmul.f32 %v334_v43, %v315_v2  ;;  %v2227_v53 = vstv %s571_s3 }
 0x18a   :  { %v2215_v14 = vpack.c.bf16 %v366_v59, %v365_v49  ;;  %v2229_v9 = vstv %s1189_s17  ;;  %v575_v12 = vmul.f32 %v2227_v53, %v2017_v52  ;;  %v576_v47 = vmul.f32 %v2227_v53, %v2021_v63 }
 0x18b   :  { %v349_v11 = vmul.f32 %v333_v7, %v314_v42  ;;  %v2217_v32 = vpack.c.bf16 %v368_v58, %v367_v30  ;;  %v370_v55 = vmul.f32 %v2157_v28, %v350_v21  ;;  %v574_v52 = vmul.f32 %v2227_v53, %v2023_v1 }
 0x18c   :  { %v579_v18 = vmul.f32 %v2227_v53, %v2031_v17  ;;  %v577_v1 = vmul.f32 %v2227_v53, %v2035_v29  ;;  %v580_v4 = vmul.f32 %v2227_v53, %v2037_v35  ;;  %v578_v17 = vmul.f32 %v2227_v53, %v2039_v37 }
 0x18d   :  { %v369_v31 = vmul.f32 %v2157_v28, %v349_v11  ;;  %v573_v28 = vmul.f32 %v2227_v53, %v2019_v61  ;;  %v583_v7 = vmul.f32 %v2227_v53, %v2049_v62  ;;  %v581_v37 = vmul.f32 %v2227_v53, %v2051_v8 }
 0x18e   :  { %1417 = vmatmul.mubr.bf16.gmra.mrb[20].mxu1 %v2199_v5  ;;  %v584_v30 = vmul.f32 %v2227_v53, %v2053_v22  ;;  %v582_v62 = vmul.f32 %v2227_v53, %v2055_v33  ;;  %v2527_v33 = vld [vmem:[#allocation18_spill] sm:$0xff] }
 0x18f   :  { %1420 = vmatprep.mubr.bf16.mxu1 %v2201_v40  ;;  %v2223_v56 = vpack.c.bf16 %v370_v55, %v369_v31 }
 0x196   :  { %1421 = vmatmul.mubr.bf16.gmra.mrb[24].mxu1 %v2215_v14 }
 0x197   :  { %1424 = vmatprep.mubr.bf16.mxu1 %v2217_v32 }
 0x19e   :  { %1425 = vmatmul.mubr.bf16.gmra.mrb[28].mxu1 %v2223_v56 }
 0x19f   :  { %1476 = vmatprep.mubr.bf16.mxu1 %v2169_v10 }
 0x259   :  { %v1414_v3 = vpop.f32.mrb[16].mxu1 }
 0x25a   :  { %v706_v25 = vmul.f32 %v1414_v3, %v2229_v9  ;;  %v631_v48 = vpop.f32.mrb[17].mxu1 }
 0x25b   :  { %v704_v19 = vmul.f32 %v2229_v9, %v631_v48  ;;  %v1415_v20 = vpop.f32.mrb[18].mxu1 }
 0x25c   :  { %v2239_v24 = vadd.f32 %v706_v25, %v575_v12  ;;  %v695_v41 = vpack.c.bf16 %v1415_v20, %v1414_v3  ;;  %v707_v38 = vmul.f32 %v1415_v20, %v2229_v9  ;;  %v634_v34 = vpop.f32.mrb[19].mxu1  ;;  %v585_v20 = vmul.f32 %v2227_v53, %v2527_v33 }
 0x25d   :  { %v2244_v44 = vadd.f32 %v704_v19, %v573_v28  ;;  %v694_v26 = vpack.c.bf16 %v634_v34, %v631_v48  ;;  %v705_v61 = vmul.f32 %v2229_v9, %v634_v34  ;;  %v587_v48 = vmul.f32 %v2227_v53, %v2065_v0  ;;  %v2529_v0 = vld [vmem:[#allocation20_spill] sm:$0xff] }
 0x25e   :  { %v2247_v15 = vadd.f32 %v707_v38, %v576_v47  ;;  %v2528_v38 = vld [vmem:[#allocation19_spill] sm:$0xff] }
 0x25f   :  { %v2249_v60 = vadd.f32 %v705_v61, %v574_v52  ;;  %1428 = vmatprep.subr.bf16.mxu0 %v694_v26  ;;  %v588_v34 = vmul.f32 %v2227_v53, %v2528_v38 }
 0x260   :  { %1429 = vmatpush3.bf16.msra.mxu0 %v694_v26 }
 0x261   :  { %v1418_v63 = vpop.f32.mrb[20].mxu1  ;;  %1430 = vmatprep.subr.bf16.mxu0 %v695_v41 }
 0x262   :  { %v710_v50 = vmul.f32 %v1418_v63, %v2229_v9  ;;  %v647_v57 = vpop.f32.mrb[21].mxu1 }
 0x263   :  { %v708_v51 = vmul.f32 %v2229_v9, %v647_v57  ;;  %v1419_v23 = vpop.f32.mrb[22].mxu1 }
 0x264   :  { %v2259_v16 = vadd.f32 %v710_v50, %v579_v18  ;;  %v697_v45 = vpack.c.bf16 %v1419_v23, %v1418_v63  ;;  %v711_v46 = vmul.f32 %v1419_v23, %v2229_v9  ;;  %v650_v13 = vpop.f32.mrb[23].mxu1  ;;  %1431 = vmatpush3.bf16.msra.mxu0 %v695_v41  ;;  %v586_v18 = vmul.f32 %v2227_v53, %v2529_v0 }
 0x265   :  { %v2264_v6 = vadd.f32 %v708_v51, %v577_v1  ;;  %v696_v36 = vpack.c.bf16 %v650_v13, %v647_v57  ;;  %v709_v29 = vmul.f32 %v2229_v9, %v650_v13  ;;  %v2319_v53 = vstv %s1190_s9 }
 0x266   :  { %v2267_v43 = vadd.f32 %v711_v46, %v580_v4 }
 0x267   :  { %v2269_v54 = vadd.f32 %v709_v29, %v578_v17  ;;  %1432 = vmatprep.subr.bf16.mxu0 %v696_v36 }
 0x268   :  { %1433 = vmatpush3.bf16.msra.mxu0 %v696_v36 }
 0x269   :  { %v1422_v35 = vpop.f32.mrb[24].mxu1  ;;  %1434 = vmatprep.subr.bf16.mxu0 %v697_v45 }
 0x26a   :  { %v714_v49 = vmul.f32 %v1422_v35, %v2229_v9  ;;  %v663_v59 = vpop.f32.mrb[25].mxu1 }
 0x26b   :  { %v712_v2 = vmul.f32 %v2229_v9, %v663_v59  ;;  %v1423_v42 = vpop.f32.mrb[26].mxu1 }
 0x26c   :  { %v2279_v58 = vadd.f32 %v714_v49, %v583_v7  ;;  %v699_v21 = vpack.c.bf16 %v1423_v42, %v1422_v35  ;;  %v715_v11 = vmul.f32 %v1423_v42, %v2229_v9  ;;  %v666_v31 = vpop.f32.mrb[27].mxu1  ;;  %1435 = vmatpush3.bf16.msra.mxu0 %v697_v45 }
 0x26d   :  { %v2284_v55 = vadd.f32 %v712_v2, %v581_v37  ;;  %v698_v3 = vpack.c.bf16 %v666_v31, %v663_v59  ;;  %v713_v8 = vmul.f32 %v2229_v9, %v666_v31 }
 0x26e   :  { %v2287_v12 = vadd.f32 %v715_v11, %v584_v30 }
 0x26f   :  { %v2289_v25 = vadd.f32 %v713_v8, %v582_v62  ;;  %1436 = vmatprep.subr.bf16.mxu0 %v698_v3 }
 0x270   :  { %1437 = vmatpush3.bf16.msra.mxu0 %v698_v3 }
 0x271   :  { %v1426_v22 = vpop.f32.mrb[28].mxu1  ;;  %1438 = vmatprep.subr.bf16.mxu0 %v699_v21 }
 0x272   :  { %v718_v28 = vmul.f32 %v1426_v22, %v2229_v9  ;;  %v679_v19 = vpop.f32.mrb[29].mxu1 }
 0x273   :  { %v716_v47 = vmul.f32 %v2229_v9, %v679_v19  ;;  %v1427_v41 = vpop.f32.mrb[30].mxu1 }
 0x274   :  { %v2299_v52 = vadd.f32 %v718_v28, %v587_v48  ;;  %v701_v26 = vpack.c.bf16 %v1427_v41, %v1426_v22  ;;  %v719_v61 = vmul.f32 %v1427_v41, %v2229_v9  ;;  %v682_v63 = vpop.f32.mrb[31].mxu1  ;;  %1439 = vmatpush3.bf16.msra.mxu0 %v699_v21 }
 0x275   :  { %v2304_v50 = vadd.f32 %v716_v47, %v585_v20  ;;  %v700_v57 = vpack.c.bf16 %v682_v63, %v679_v19  ;;  %v717_v1 = vmul.f32 %v2229_v9, %v682_v63 }
 0x276   :  { %v2307_v51 = vadd.f32 %v719_v61, %v588_v34 }
 0x277   :  { %v2309_v23 = vadd.f32 %v717_v1, %v586_v18  ;;  %1440 = vmatprep.subr.bf16.mxu0 %v700_v57 }
 0x278   :  { %1441 = vmatpush3.bf16.msra.mxu0 %v700_v57 }
 0x279   :  { %1442 = vmatprep.subr.bf16.mxu0 %v701_v26 }
 0x27c   :  { %1443 = vmatpush3.bf16.msra.mxu0 %v701_v26 }
 0x27f   :  { %1445 = vmatmul.mubr.bf16.vlgmr.msra.gmra.mrb[4].mxu0 %v2171_v27 }
 0x280   :  { %1448 = vmatprep.mubr.bf16.mxu0 %v2175_v39 }
 0x287   :  { %1449 = vmatmul.mubr.bf16.gmra.mrb[8].mxu0 %v2199_v5 }
 0x288   :  { %1452 = vmatprep.mubr.bf16.mxu0 %v2201_v40 }
 0x28f   :  { %1453 = vmatmul.mubr.bf16.gmra.mrb[12].mxu0 %v2215_v14 }
 0x290   :  { %1456 = vmatprep.mubr.bf16.mxu0 %v2217_v32 }
 0x297   :  { %1457 = vmatmul.mubr.bf16.gmra.mrb[16].mxu0 %v2223_v56 }
 0x298   :  { %1508 = vmatprep.mubr.bf16.mxu0 %v2169_v10 }
 0x352   :  { %v1446_v9 = vpop.f32.mrb[4].mxu0 }
 0x353   :  { %v845_v4 = vmul.f32 %v1446_v9, %v2319_v53  ;;  %v770_v45 = vpop.f32.mrb[5].mxu0 }
 0x354   :  { %v843_v46 = vmul.f32 %v2319_v53, %v770_v45  ;;  %v1447_v13 = vpop.f32.mrb[6].mxu0 }
 0x355   :  { %v2324_v17 = vadd.f32 %v845_v4, %v2239_v24  ;;  %v834_v36 = vpack.c.bf16 %v1447_v13, %v1446_v9  ;;  %v846_v29 = vmul.f32 %v1447_v13, %v2319_v53  ;;  %v773_v35 = vpop.f32.mrb[7].mxu0 }
 0x356   :  { %v2328_v7 = vadd.f32 %v843_v46, %v2244_v44  ;;  %v833_v10 = vpack.c.bf16 %v773_v35, %v770_v45  ;;  %v844_v49 = vmul.f32 %v2319_v53, %v773_v35 }
 0x357   :  { %v2332_v59 = vadd.f32 %v846_v29, %v2247_v15 }
 0x358   :  { %v2335_v37 = vadd.f32 %v844_v49, %v2249_v60  ;;  %1460 = vmatprep.subr.bf16.mxu1 %v833_v10 }
 0x359   :  { %1461 = vmatpush3.bf16.msra.mxu1 %v833_v10 }
 0x35a   :  { %v1450_v24 = vpop.f32.mrb[8].mxu0  ;;  %1462 = vmatprep.subr.bf16.mxu1 %v834_v36 }
 0x35b   :  { %v849_v2 = vmul.f32 %v1450_v24, %v2319_v53  ;;  %v786_v42 = vpop.f32.mrb[9].mxu0 }
 0x35c   :  { %v847_v30 = vmul.f32 %v2319_v53, %v786_v42  ;;  %v1451_v44 = vpop.f32.mrb[10].mxu0 }
 0x35d   :  { %v2340_v21 = vadd.f32 %v849_v2, %v2259_v16  ;;  %v836_v11 = vpack.c.bf16 %v1451_v44, %v1450_v24  ;;  %v850_v15 = vmul.f32 %v1451_v44, %v2319_v53  ;;  %v789_v31 = vpop.f32.mrb[11].mxu0  ;;  %1463 = vmatpush3.bf16.msra.mxu1 %v834_v36 }
 0x35e   :  { %v2344_v60 = vadd.f32 %v847_v30, %v2264_v6  ;;  %v835_v62 = vpack.c.bf16 %v789_v31, %v786_v42  ;;  %v848_v3 = vmul.f32 %v2319_v53, %v789_v31 }
 0x35f   :  { %v2348_v8 = vadd.f32 %v850_v15, %v2267_v43 }
 0x360   :  { %v2351_v22 = vadd.f32 %v848_v3, %v2269_v54  ;;  %1464 = vmatprep.subr.bf16.mxu1 %v835_v62 }
 0x361   :  { %1465 = vmatpush3.bf16.msra.mxu1 %v835_v62 }
 0x362   :  { %v1454_v16 = vpop.f32.mrb[12].mxu0  ;;  %1466 = vmatprep.subr.bf16.mxu1 %v836_v11 }
 0x363   :  { %v853_v48 = vmul.f32 %v1454_v16, %v2319_v53  ;;  %v802_v28 = vpop.f32.mrb[13].mxu0 }
 0x364   :  { %v851_v19 = vmul.f32 %v2319_v53, %v802_v28  ;;  %v1455_v6 = vpop.f32.mrb[14].mxu0 }
 0x365   :  { %v2356_v33 = vadd.f32 %v853_v48, %v2279_v58  ;;  %v838_v20 = vpack.c.bf16 %v1455_v6, %v1454_v16  ;;  %v854_v43 = vmul.f32 %v1455_v6, %v2319_v53  ;;  %v805_v47 = vpop.f32.mrb[15].mxu0  ;;  %1467 = vmatpush3.bf16.msra.mxu1 %v836_v11 }
 0x366   :  { %v2360_v54 = vadd.f32 %v851_v19, %v2284_v55  ;;  %v837_v41 = vpack.c.bf16 %v805_v47, %v802_v28  ;;  %v852_v38 = vmul.f32 %v2319_v53, %v805_v47 }
 0x367   :  { %v2364_v34 = vadd.f32 %v854_v43, %v2287_v12 }
 0x368   :  { %v2367_v26 = vadd.f32 %v852_v38, %v2289_v25  ;;  %1468 = vmatprep.subr.bf16.mxu1 %v837_v41 }
 0x369   :  { %1469 = vmatpush3.bf16.msra.mxu1 %v837_v41 }
 0x36a   :  { %v1458_v58 = vpop.f32.mrb[16].mxu0  ;;  %1470 = vmatprep.subr.bf16.mxu1 %v838_v20 }
 0x36b   :  { %v857_v61 = vmul.f32 %v1458_v58, %v2319_v53  ;;  %v818_v63 = vpop.f32.mrb[17].mxu0 }
 0x36c   :  { %v855_v0 = vmul.f32 %v2319_v53, %v818_v63  ;;  %v1459_v55 = vpop.f32.mrb[18].mxu0 }
 0x36d   :  { %v2372_v18 = vadd.f32 %v857_v61, %v2299_v52  ;;  %v840_v57 = vpack.c.bf16 %v1459_v55, %v1458_v58  ;;  %v858_v12 = vmul.f32 %v1459_v55, %v2319_v53  ;;  %v821_v1 = vpop.f32.mrb[19].mxu0  ;;  %1471 = vmatpush3.bf16.msra.mxu1 %v838_v20  ;;  %v2393_v52 = vstv %s1191_s10 }
 0x36e   :  { %v2376_v25 = vadd.f32 %v855_v0, %v2304_v50  ;;  %v839_v9 = vpack.c.bf16 %v821_v1, %v818_v63  ;;  %v856_v4 = vmul.f32 %v2319_v53, %v821_v1 }
 0x36f   :  { %v2380_v45 = vadd.f32 %v858_v12, %v2307_v51 }
 0x370   :  { %v2383_v46 = vadd.f32 %v856_v4, %v2309_v23  ;;  %1472 = vmatprep.subr.bf16.mxu1 %v839_v9 }
 0x371   :  { %1473 = vmatpush3.bf16.msra.mxu1 %v839_v9 }
 0x372   :  { %1474 = vmatprep.subr.bf16.mxu1 %v840_v57 }
 0x375   :  { %1475 = vmatpush3.bf16.msra.mxu1 %v840_v57 }
 0x378   :  { %1477 = vmatmul.mubr.bf16.vlgmr.msra.gmra.mrb[32].mxu1 %v2171_v27 }
 0x379   :  { %1480 = vmatprep.mubr.bf16.mxu1 %v2175_v39 }
 0x380   :  { %1481 = vmatmul.mubr.bf16.gmra.mrb[36].mxu1 %v2199_v5 }
 0x381   :  { %1484 = vmatprep.mubr.bf16.mxu1 %v2201_v40 }
 0x388   :  { %1485 = vmatmul.mubr.bf16.gmra.mrb[40].mxu1 %v2215_v14 }
 0x389   :  { %1488 = vmatprep.mubr.bf16.mxu1 %v2217_v32 }
 0x390   :  { %1489 = vmatmul.mubr.bf16.gmra.mrb[44].mxu1 %v2223_v56 }
 0x391   :  { %1516 = vmatprep.mubr.bf16.mxu1 %v2201_v40 }
 0x44b   :  { %v1478_v50 = vpop.f32.mrb[32].mxu1 }
 0x44c   :  { %v984_v51 = vmul.f32 %v1478_v50, %v2393_v52  ;;  %v909_v23 = vpop.f32.mrb[33].mxu1 }
 0x44d   :  { %v982_v53 = vmul.f32 %v2393_v52, %v909_v23  ;;  %v1479_v13 = vpop.f32.mrb[34].mxu1 }
 0x44e   :  { %v2398_v36 = vadd.f32 %v984_v51, %v2324_v17  ;;  %v973_v29 = vpack.c.bf16 %v1479_v13, %v1478_v50  ;;  %v985_v35 = vmul.f32 %v1479_v13, %v2393_v52  ;;  %v912_v10 = vpop.f32.mrb[35].mxu1 }
 0x44f   :  { %v2402_v49 = vadd.f32 %v982_v53, %v2328_v7  ;;  %v972_v40 = vpack.c.bf16 %v912_v10, %v909_v23  ;;  %v983_v24 = vmul.f32 %v2393_v52, %v912_v10 }
 0x450   :  { %v2406_v2 = vadd.f32 %v985_v35, %v2332_v59 }
 0x451   :  { %v2409_v42 = vadd.f32 %v983_v24, %v2335_v37  ;;  %1492 = vmatprep.subr.bf16.mxu0 %v972_v40  ;;  %1548 = vmatprep.subr.bf16.mxu1 %v972_v40 }
 0x452   :  { %1493 = vmatpush3.bf16.msra.mxu0 %v972_v40  ;;  %1556 = vmatpush3.bf16.msra.mxu1 %v972_v40 }
 0x453   :  { %v1482_v17 = vpop.f32.mrb[36].mxu1  ;;  %1494 = vmatprep.subr.bf16.mxu0 %v973_v29  ;;  %1549 = vmatprep.subr.bf16.mxu1 %v973_v29 }
 0x454   :  { %v988_v30 = vmul.f32 %v1482_v17, %v2393_v52  ;;  %v925_v7 = vpop.f32.mrb[37].mxu1 }
 0x455   :  { %v986_v44 = vmul.f32 %v2393_v52, %v925_v7  ;;  %v1483_v11 = vpop.f32.mrb[38].mxu1 }
 0x456   :  { %v2414_v15 = vadd.f32 %v988_v30, %v2340_v21  ;;  %v975_v59 = vpack.c.bf16 %v1483_v11, %v1482_v17  ;;  %v989_v37 = vmul.f32 %v1483_v11, %v2393_v52  ;;  %v928_v31 = vpop.f32.mrb[39].mxu1  ;;  %1495 = vmatpush3.bf16.msra.mxu0 %v973_v29  ;;  %1557 = vmatpush3.bf16.msra.mxu1 %v973_v29 }
 0x457   :  { %v2418_v62 = vadd.f32 %v986_v44, %v2344_v60  ;;  %v974_v3 = vpack.c.bf16 %v928_v31, %v925_v7  ;;  %v987_v16 = vmul.f32 %v2393_v52, %v928_v31 }
 0x458   :  { %v2422_v48 = vadd.f32 %v989_v37, %v2348_v8 }
 0x459   :  { %v2425_v28 = vadd.f32 %v987_v16, %v2351_v22  ;;  %1496 = vmatprep.subr.bf16.mxu0 %v974_v3  ;;  %1550 = vmatprep.subr.bf16.mxu1 %v974_v3 }
 0x45a   :  { %1497 = vmatpush3.bf16.msra.mxu0 %v974_v3  ;;  %1558 = vmatpush3.bf16.msra.mxu1 %v974_v3 }
 0x45b   :  { %v1486_v21 = vpop.f32.mrb[40].mxu1  ;;  %1498 = vmatprep.subr.bf16.mxu0 %v975_v59  ;;  %1551 = vmatprep.subr.bf16.mxu1 %v975_v59 }
 0x45c   :  { %v992_v19 = vmul.f32 %v1486_v21, %v2393_v52  ;;  %v941_v60 = vpop.f32.mrb[41].mxu1 }
 0x45d   :  { %v990_v6 = vmul.f32 %v2393_v52, %v941_v60  ;;  %v1487_v20 = vpop.f32.mrb[42].mxu1 }
 0x45e   :  { %v1008_v43 = vadd.f32 %v992_v19, %v2356_v33  ;;  %v977_v8 = vpack.c.bf16 %v1487_v20, %v1486_v21  ;;  %v993_v47 = vmul.f32 %v1487_v20, %v2393_v52  ;;  %v944_v22 = vpop.f32.mrb[43].mxu1  ;;  %1499 = vmatpush3.bf16.msra.mxu0 %v975_v59  ;;  %1559 = vmatpush3.bf16.msra.mxu1 %v975_v59 }
 0x45f   :  { %v1006_v41 = vadd.f32 %v990_v6, %v2360_v54  ;;  %v976_v38 = vpack.c.bf16 %v944_v22, %v941_v60  ;;  %v991_v58 = vmul.f32 %v2393_v52, %v944_v22 }
 0x460   :  { %v2434_v61 = vadd.f32 %v993_v47, %v2364_v34 }
 0x461   :  { %v2437_v63 = vadd.f32 %v991_v58, %v2367_v26  ;;  %1500 = vmatprep.subr.bf16.mxu0 %v976_v38  ;;  %1552 = vmatprep.subr.bf16.mxu1 %v976_v38 }
 0x462   :  { %1501 = vmatpush3.bf16.msra.mxu0 %v976_v38  ;;  %1560 = vmatpush3.bf16.msra.mxu1 %v976_v38 }
 0x463   :  { %v1490_v33 = vpop.f32.mrb[44].mxu1  ;;  %1502 = vmatprep.subr.bf16.mxu0 %v977_v8  ;;  %1553 = vmatprep.subr.bf16.mxu1 %v977_v8 }
 0x464   :  { %v996_v0 = vmul.f32 %v1490_v33, %v2393_v52  ;;  %v957_v55 = vpop.f32.mrb[45].mxu1 }
 0x465   :  { %v994_v54 = vmul.f32 %v2393_v52, %v957_v55  ;;  %v1491_v57 = vpop.f32.mrb[46].mxu1 }
 0x466   :  { %v2442_v12 = vadd.f32 %v996_v0, %v2372_v18  ;;  %v979_v34 = vpack.c.bf16 %v1491_v57, %v1490_v33  ;;  %v997_v26 = vmul.f32 %v1491_v57, %v2393_v52  ;;  %v960_v1 = vpop.f32.mrb[47].mxu1  ;;  %1503 = vmatpush3.bf16.msra.mxu0 %v977_v8  ;;  %1561 = vmatpush3.bf16.msra.mxu1 %v977_v8  ;;  %v1112_v18 = vstv %s1192_s11 }
 0x467   :  { %v2446_v9 = vadd.f32 %v994_v54, %v2376_v25  ;;  %v978_v4 = vpack.c.bf16 %v960_v1, %v957_v55  ;;  %v995_v50 = vmul.f32 %v2393_v52, %v960_v1 }
 0x468   :  { %v2450_v51 = vadd.f32 %v997_v26, %v2380_v45 }
 0x469   :  { %v2453_v23 = vadd.f32 %v995_v50, %v2383_v46  ;;  %1504 = vmatprep.subr.bf16.mxu0 %v978_v4  ;;  %1554 = vmatprep.subr.bf16.mxu1 %v978_v4 }
 0x46a   :  { %1505 = vmatpush3.bf16.msra.mxu0 %v978_v4  ;;  %1562 = vmatpush3.bf16.msra.mxu1 %v978_v4 }
 0x46b   :  { %1506 = vmatprep.subr.bf16.mxu0 %v979_v34  ;;  %1555 = vmatprep.subr.bf16.mxu1 %v979_v34 }
 0x46e   :  { %1507 = vmatpush3.bf16.msra.mxu0 %v979_v34  ;;  %1563 = vmatpush3.bf16.msra.mxu1 %v979_v34 }
 0x471   :  { %1509 = vmatmul.mubr.bf16.vlgmr.msra.gmra.mrb[20].mxu0 %v2171_v27  ;;  %1517 = vmatmul.mubr.bf16.vlgmr.msra.gmra.mrb[48].mxu1 %v2215_v14 }
 0x472   :  { %1512 = vmatprep.mubr.bf16.mxu0 %v2175_v39  ;;  %1520 = vmatprep.mubr.bf16.mxu1 %v2217_v32 }
 0x479   :  { %1513 = vmatmul.mubr.bf16.gmra.mrb[24].mxu0 %v2199_v5  ;;  %1521 = vmatmul.mubr.bf16.gmra.mrb[52].mxu1 %v2223_v56 }
 0x544   :  { %v1510_v25 = vpop.f32.mrb[20].mxu0  ;;  %v1518_v45 = vpop.f32.mrb[48].mxu1 }
 0x545   :  { %v1115_v46 = vmul.f32 %v1510_v25, %v1112_v18  ;;  %v1123_v52 = vmul.f32 %v1518_v45, %v1112_v18  ;;  %v1048_v53 = vpop.f32.mrb[21].mxu0  ;;  %v1080_v13 = vpop.f32.mrb[49].mxu1 }
 0x546   :  { %v1113_v29 = vmul.f32 %v1112_v18, %v1048_v53  ;;  %v1121_v27 = vmul.f32 %v1112_v18, %v1080_v13  ;;  %v1511_v35 = vpop.f32.mrb[22].mxu0  ;;  %v1519_v14 = vpop.f32.mrb[50].mxu1 }
 0x547   :  { %v1131_v39 = vadd.f32 %v1115_v46, %v2398_v36  ;;  %v1139_v10 = vadd.f32 %v1123_v52, %v1008_v43  ;;  %v1116_v32 = vmul.f32 %v1511_v35, %v1112_v18  ;;  %v1124_v40 = vmul.f32 %v1519_v14, %v1112_v18  ;;  %v1051_v5 = vpop.f32.mrb[23].mxu0  ;;  %v1083_v24 = vpop.f32.mrb[51].mxu1 }
 0x548   :  { %v1129_v56 = vadd.f32 %v1113_v29, %v2402_v49  ;;  %v1137_v17 = vadd.f32 %v1121_v27, %v1006_v41  ;;  %v1114_v30 = vmul.f32 %v1112_v18, %v1051_v5  ;;  %v1122_v7 = vmul.f32 %v1112_v18, %v1083_v24 }
 0x549   :  { %1147 = vst [vmem:[#allocation12 + $0x10] sm:$0xff] %v1131_v39  ;;  %1155 = vst [vmem:[#allocation12 + $0x50] sm:$0xff] %v1139_v10  ;;  %v1132_v44 = vadd.f32 %v1116_v32, %v2406_v2  ;;  %v1140_v11 = vadd.f32 %v1124_v40, %v2434_v61 }
 0x54a   :  { %1145 = vst [vmem:[#allocation12] sm:$0xff] %v1129_v56  ;;  %1153 = vst [vmem:[#allocation12 + $0x40] sm:$0xff] %v1137_v17  ;;  %v1130_v36 = vadd.f32 %v1114_v30, %v2409_v42  ;;  %v1138_v59 = vadd.f32 %v1122_v7, %v2437_v63 }
 0x54b   :  { %1148 = vst [vmem:[#allocation12 + $0x18] sm:$0xff] %v1132_v44  ;;  %1156 = vst [vmem:[#allocation12 + $0x58] sm:$0xff] %v1140_v11 }
 0x54c   :  { %1146 = vst [vmem:[#allocation12 + $0x8] sm:$0xff] %v1130_v36  ;;  %1154 = vst [vmem:[#allocation12 + $0x48] sm:$0xff] %v1138_v59  ;;  %v1514_v49 = vpop.f32.mrb[24].mxu0  ;;  %v1522_v37 = vpop.f32.mrb[52].mxu1 }
 0x54d   :  { %v1119_v31 = vmul.f32 %v1514_v49, %v1112_v18  ;;  %v1127_v3 = vmul.f32 %v1522_v37, %v1112_v18  ;;  %v1064_v16 = vpop.f32.mrb[25].mxu0  ;;  %v1096_v21 = vpop.f32.mrb[53].mxu1 }
 0x54e   :  { %v1117_v19 = vmul.f32 %v1112_v18, %v1064_v16  ;;  %v1125_v2 = vmul.f32 %v1112_v18, %v1096_v21  ;;  %v1515_v60 = vpop.f32.mrb[26].mxu0  ;;  %v1523_v6 = vpop.f32.mrb[54].mxu1 }
 0x54f   :  { %v1135_v20 = vadd.f32 %v1119_v31, %v2414_v15  ;;  %v1143_v42 = vadd.f32 %v1127_v3, %v2442_v12  ;;  %v1120_v43 = vmul.f32 %v1515_v60, %v1112_v18  ;;  %v1128_v8 = vmul.f32 %v1523_v6, %v1112_v18  ;;  %v1067_v47 = vpop.f32.mrb[27].mxu0  ;;  %v1099_v22 = vpop.f32.mrb[55].mxu1 }
 0x550   :  { %v1133_v41 = vadd.f32 %v1117_v19, %v2418_v62  ;;  %v1141_v38 = vadd.f32 %v1125_v2, %v2446_v9  ;;  %v1118_v58 = vmul.f32 %v1112_v18, %v1067_v47  ;;  %v1126_v61 = vmul.f32 %v1112_v18, %v1099_v22 }
 0x551   :  { %1151 = vst [vmem:[#allocation12 + $0x30] sm:$0xff] %v1135_v20  ;;  %1159 = vst [vmem:[#allocation12 + $0x70] sm:$0xff] %v1143_v42  ;;  %v1136_v63 = vadd.f32 %v1120_v43, %v2422_v48  ;;  %v1144_v15 = vadd.f32 %v1128_v8, %v2450_v51 }
 0x552   :  { %1149 = vst [vmem:[#allocation12 + $0x20] sm:$0xff] %v1133_v41  ;;  %1157 = vst [vmem:[#allocation12 + $0x60] sm:$0xff] %v1141_v38  ;;  %v1134_v33 = vadd.f32 %v1118_v58, %v2425_v28  ;;  %v1142_v0 = vadd.f32 %v1126_v61, %v2453_v23 }
 0x553   :  { %1152 = vst [vmem:[#allocation12 + $0x38] sm:$0xff] %v1136_v63  ;;  %1160 = vst [vmem:[#allocation12 + $0x78] sm:$0xff] %v1144_v15 }
 0x554   :  { %1150 = vst [vmem:[#allocation12 + $0x28] sm:$0xff] %v1134_v33  ;;  %1158 = vst [vmem:[#allocation12 + $0x68] sm:$0xff] %v1142_v0 }
 0x555   :  { %1729 = shalt.err (!%p1726_p11)
}
 0x556   :  { %s1730_s18 = scalar_lea.hbm %s2496_s6, 2048 }
 0x557   :  { %p1731_p12 = scmp.ne.s32.totalorder %s2496_s6, %s1730_s18  ;;  %p1734_p13 = scmp.lt.u32.totalorder %s1730_s18, %s2496_s6 }
 0x559   :  { %p1736_p0 = pnand %p1734_p13, %p1731_p12 }
 0x55b   :  { %1739 = shalt.err (!%p1736_p0)
}
 0x55c   :  { %1172 = dma.vmem_to_hbm [thread:$0]  %s1167_s13, 2048, %s2496_s6, [#allocation6], %s1755_s2, %s1755_s2, %s1756_s30  }
 0x55d   :  { %1748 = dma.done.wait [#allocation6], 2048  }
 0x55e   :  { %1749 = vsyncadd [#allocation6], 4294965248 }
 0x55f   :  { %1176 = vsyncpa [#allocation5], 1 }
 0x560   :  { %1177 = vsyncpa [#allocation8], 1 }
 0x561   :  { %1178 = vsyncpa [#allocation11], 1 }
 0x562   :  { %1179 = vsyncpa [#allocation6], 1 }

</bundles_post_ra>
